<compile_context>
chip_gen: v7x
topology: tpu7x:2x2x1
jax: 0.10.0
libtpu: 0.0.40
codegen_flags: <defaults>
</compile_context>

<pallas_src>
import jax
import jax.numpy as jnp
from jax.experimental import pallas as pl
from jax.experimental.pallas import tpu as pltpu


# ---------------------------------------------------------------------------
# Fused Pallas kernel: global avg/max pool + shared MLP + sigmoid + gating
# ---------------------------------------------------------------------------
def _channel_gate_kernel(x_ref, w1_ref, b1_ref, w2_ref, b2_ref, o_ref):
    x = x_ref[0]                                           # (C, HW) f32, VMEM
    inv_hw = 1.0 / x.shape[-1]
    p_avg = jnp.sum(x, axis=-1, keepdims=True) * inv_hw    # (C, 1)  avg pool
    p_max = jnp.max(x, axis=-1, keepdims=True)             # (C, 1)  max pool

    w1 = w1_ref[...]    # (Cr, C)  torch Linear #1 weight (out, in)
    b1 = b1_ref[...]    # (Cr, 1)
    w2 = w2_ref[...]    # (C, Cr)  torch Linear #2 weight (out, in)
    b2 = b2_ref[...]    # (C, 1)

    def mlp(p):                                            # (C, 1) -> (C, 1)
        h = jnp.dot(w1, p, preferred_element_type=jnp.float32) + b1
        h = jnp.maximum(h, 0.0)                            # ReLU
        return jnp.dot(w2, h, preferred_element_type=jnp.float32) + b2

    att = mlp(p_avg) + mlp(p_max)                          # (C, 1)
    scale = 1.0 / (1.0 + jnp.exp(-att))                    # sigmoid (EUP)
    o_ref[0] = x * scale                                   # lane-broadcast mult


def channel_gate(x, params):
    """ChannelGate forward (pool_types=['avg','max']). x: (N, C, H, W) f32."""
    N, C, H, W = x.shape
    w1, b1, w2, b2 = params["w1"], params["b1"], params["w2"], params["b2"]
    Cr = w1.shape[0]
    HW = H * W
    x3 = x.reshape(N, C, HW)                               # contiguous reshape

    out = pl.pallas_call(
        _channel_gate_kernel,
        out_shape=jax.ShapeDtypeStruct((N, C, HW), x.dtype),
        grid=(N,),
        in_specs=[
            pl.BlockSpec((1, C, HW), lambda n: (n, 0, 0)),   # x, per-batch block
            pl.BlockSpec((Cr, C), lambda n: (0, 0)),         # W1 (resident)
            pl.BlockSpec((Cr, 1), lambda n: (0, 0)),         # b1
            pl.BlockSpec((C, Cr), lambda n: (0, 0)),         # W2
            pl.BlockSpec((C, 1), lambda n: (0, 0)),          # b2
        ],
        out_specs=pl.BlockSpec((1, C, HW), lambda n: (n, 0, 0)),
        compiler_params=pltpu.CompilerParams(
            dimension_semantics=("parallel",)),              # megacore on v7x
    )(x3, w1, b1.reshape(Cr, 1), w2, b2.reshape(C, 1))
    return out.reshape(N, C, H, W)


# ---------------------------------------------------------------------------
# Pure-JAX reference (mirrors the PyTorch forward) for correctness checking
# ---------------------------------------------------------------------------
def channel_gate_ref(x, params):
    avg = jnp.mean(x, axis=(2, 3))                         # F.avg_pool2d(full)
    mx = jnp.max(x, axis=(2, 3))                           # F.max_pool2d(full)

    def mlp(v):                                            # Flatten->Linear->ReLU->Linear
        h = jnp.maximum(v @ params["w1"].T + params["b1"], 0.0)
        return h @ params["w2"].T + params["b2"]

    att = mlp(avg) + mlp(mx)
    scale = jax.nn.sigmoid(att)
    return x * scale[:, :, None, None]


if __name__ == "__main__":
    key = jax.random.PRNGKey(0)
    kx, k1, k2, k3, k4 = jax.random.split(key, 5)

    # gate_channels=128, reduction_ratio=16 -> hidden=8; small NCHW input.
    N, C, H, W = 4, 128, 8, 16
    Cr = C // 16
    x = jax.random.normal(kx, (N, C, H, W), jnp.float32)
    params = dict(
        w1=0.1 * jax.random.normal(k1, (Cr, C), jnp.float32),   # torch (out, in)
        b1=0.1 * jax.random.normal(k2, (Cr,), jnp.float32),
        w2=0.1 * jax.random.normal(k3, (C, Cr), jnp.float32),   # torch (out, in)
        b2=0.1 * jax.random.normal(k4, (C,), jnp.float32),
    )

    out = jax.block_until_ready(jax.jit(channel_gate)(x, params))
    ref = jax.block_until_ready(jax.jit(channel_gate_ref)(x, params))

    assert out.shape == (N, C, H, W), out.shape
    assert out.dtype == jnp.float32
    err = float(jnp.max(jnp.abs(out - ref)))
    assert err < 2e-3, f"max abs err {err}"
    print("KERNEL_OK")
</pallas_src>

<mosaic_0001>
module attributes {stable_mosaic.version = 11 : i64} {
  func.func @_channel_gate_kernel(%arg0: i32, %arg1: memref<1x128x128xf32, #tpu.memory_space<vmem>>, %arg2: memref<8x128xf32, #tpu.memory_space<vmem>>, %arg3: memref<8x1xf32, #tpu.memory_space<vmem>>, %arg4: memref<128x8xf32, #tpu.memory_space<vmem>>, %arg5: memref<128x1xf32, #tpu.memory_space<vmem>>, %arg6: memref<1x128x128xf32, #tpu.memory_space<vmem>>) attributes {dimension_semantics = [#tpu.dimension_semantics<parallel>], iteration_bounds = array<i64: 4>, scalar_prefetch = 0 : i64, scratch_operands = 0 : i64, tpu.core_type = #tpu.core_type<tc>, window_params = [{transform_indices = @transform_0, window_bounds = array<i64: 1, 128, 128>}, {pipeline_mode = #tpu.pipeline_mode<synchronous>, transform_indices = @transform_1, window_bounds = array<i64: 8, 128>}, {pipeline_mode = #tpu.pipeline_mode<synchronous>, transform_indices = @transform_2, window_bounds = array<i64: 8, 1>}, {pipeline_mode = #tpu.pipeline_mode<synchronous>, transform_indices = @transform_3, window_bounds = array<i64: 128, 8>}, {pipeline_mode = #tpu.pipeline_mode<synchronous>, transform_indices = @transform_4, window_bounds = array<i64: 128, 1>}, {transform_indices = @transform_5, window_bounds = array<i64: 1, 128, 128>}]} {
    %c0 = arith.constant 0 : index
    %c0_0 = arith.constant 0 : index
    %c0_1 = arith.constant 0 : index
    %0 = vector.load %arg1[%c0, %c0_0, %c0_1] : memref<1x128x128xf32, #tpu.memory_space<vmem>>, vector<1x128x128xf32>
    %1 = vector.shape_cast %0 : vector<1x128x128xf32> to vector<128x128xf32>
    %cst = arith.constant dense<0.000000e+00> : vector<128xf32>
    %2 = vector.multi_reduction <add>, %1, %cst [1] : vector<128x128xf32> to vector<128xf32>
    %3 = vector.shape_cast %2 : vector<128xf32> to vector<128x1xf32>
    %cst_2 = arith.constant 7.812500e-03 : f32
    %4 = vector.broadcast %cst_2 : f32 to vector<128x1xf32>
    %5 = arith.mulf %3, %4 : vector<128x1xf32>
    %cst_3 = arith.constant dense<0xFF800000> : vector<128xf32>
    %6 = vector.multi_reduction <maximumf>, %1, %cst_3 [1] : vector<128x128xf32> to vector<128xf32>
    %7 = vector.shape_cast %6 : vector<128xf32> to vector<128x1xf32>
    %c0_4 = arith.constant 0 : index
    %c0_5 = arith.constant 0 : index
    %8 = vector.load %arg2[%c0_4, %c0_5] : memref<8x128xf32, #tpu.memory_space<vmem>>, vector<8x128xf32>
    %c0_6 = arith.constant 0 : index
    %c0_7 = arith.constant 0 : index
    %9 = vector.load %arg3[%c0_6, %c0_7] : memref<8x1xf32, #tpu.memory_space<vmem>>, vector<8x1xf32>
    %c0_8 = arith.constant 0 : index
    %c0_9 = arith.constant 0 : index
    %10 = vector.load %arg4[%c0_8, %c0_9] : memref<128x8xf32, #tpu.memory_space<vmem>>, vector<128x8xf32>
    %c0_10 = arith.constant 0 : index
    %c0_11 = arith.constant 0 : index
    %11 = vector.load %arg5[%c0_10, %c0_11] : memref<128x1xf32, #tpu.memory_space<vmem>>, vector<128x1xf32>
    %cst_12 = arith.constant dense<0.000000e+00> : vector<8x1xf32>
    %12 = tpu.matmul %8, %5, %cst_12 {dimension_numbers = #tpu.dot_dimension_numbers<[1], [0], [0], [1], [0, 0, 1, 1], [], []>} : vector<8x128xf32>, vector<128x1xf32>, vector<8x1xf32> -> vector<8x1xf32>
    %13 = arith.addf %12, %9 : vector<8x1xf32>
    %cst_13 = arith.constant 0.000000e+00 : f32
    %14 = vector.broadcast %cst_13 : f32 to vector<8x1xf32>
    %15 = arith.maximumf %13, %14 : vector<8x1xf32>
    %cst_14 = arith.constant dense<0.000000e+00> : vector<128x1xf32>
    %16 = tpu.matmul %10, %15, %cst_14 {dimension_numbers = #tpu.dot_dimension_numbers<[1], [0], [0], [1], [0, 0, 1, 1], [], []>} : vector<128x8xf32>, vector<8x1xf32>, vector<128x1xf32> -> vector<128x1xf32>
    %17 = arith.addf %16, %11 : vector<128x1xf32>
    %cst_15 = arith.constant dense<0.000000e+00> : vector<8x1xf32>
    %18 = tpu.matmul %8, %7, %cst_15 {dimension_numbers = #tpu.dot_dimension_numbers<[1], [0], [0], [1], [0, 0, 1, 1], [], []>} : vector<8x128xf32>, vector<128x1xf32>, vector<8x1xf32> -> vector<8x1xf32>
    %19 = arith.addf %18, %9 : vector<8x1xf32>
    %cst_16 = arith.constant 0.000000e+00 : f32
    %20 = vector.broadcast %cst_16 : f32 to vector<8x1xf32>
    %21 = arith.maximumf %19, %20 : vector<8x1xf32>
    %cst_17 = arith.constant dense<0.000000e+00> : vector<128x1xf32>
    %22 = tpu.matmul %10, %21, %cst_17 {dimension_numbers = #tpu.dot_dimension_numbers<[1], [0], [0], [1], [0, 0, 1, 1], [], []>} : vector<128x8xf32>, vector<8x1xf32>, vector<128x1xf32> -> vector<128x1xf32>
    %23 = arith.addf %22, %11 : vector<128x1xf32>
    %24 = arith.addf %17, %23 : vector<128x1xf32>
    %cst_18 = arith.constant 0.000000e+00 : f32
    %25 = vector.broadcast %cst_18 : f32 to vector<128x1xf32>
    %26 = arith.subf %25, %24 : vector<128x1xf32>
    %27 = math.exp %26 : vector<128x1xf32>
    %cst_19 = arith.constant 1.000000e+00 : f32
    %28 = vector.broadcast %cst_19 : f32 to vector<128x1xf32>
    %29 = arith.addf %28, %27 : vector<128x1xf32>
    %cst_20 = arith.constant 1.000000e+00 : f32
    %30 = vector.broadcast %cst_20 : f32 to vector<128x1xf32>
    %31 = arith.divf %30, %29 : vector<128x1xf32>
    %32 = vector.broadcast %31 : vector<128x1xf32> to vector<128x128xf32>
    %33 = arith.mulf %1, %32 : vector<128x128xf32>
    %c0_21 = arith.constant 0 : index
    %c0_22 = arith.constant 0 : index
    %c0_23 = arith.constant 0 : index
    %34 = vector.load %arg6[%c0_21, %c0_22, %c0_23] : memref<1x128x128xf32, #tpu.memory_space<vmem>>, vector<1x128x128xf32>
    %35 = vector.shape_cast %34 : vector<1x128x128xf32> to vector<128x128xf32>
    %36 = vector.shape_cast %33 : vector<128x128xf32> to vector<1x128x128xf32>
    tpu.vector_store %arg6[%c0_21, %c0_22, %c0_23], %36 {strides = array<i32>} : memref<1x128x128xf32, #tpu.memory_space<vmem>>, vector<1x128x128xf32>,
    return
  }
  func.func @transform_0(%arg0: i32) -> (i32, i32, i32) {
    %c0_i32 = arith.constant 0 : i32
    %c0_i32_0 = arith.constant 0 : i32
    %c0_i32_1 = arith.constant 0 : i32
    return %arg0, %c0_i32, %c0_i32_0 : i32, i32, i32
  }
  func.func @transform_1(%arg0: i32) -> (i32, i32) {
    %c0_i32 = arith.constant 0 : i32
    %c0_i32_0 = arith.constant 0 : i32
    %c0_i32_1 = arith.constant 0 : i32
    return %c0_i32, %c0_i32_0 : i32, i32
  }
  func.func @transform_2(%arg0: i32) -> (i32, i32) {
    %c0_i32 = arith.constant 0 : i32
    %c0_i32_0 = arith.constant 0 : i32
    %c0_i32_1 = arith.constant 0 : i32
    return %c0_i32, %c0_i32_0 : i32, i32
  }
  func.func @transform_3(%arg0: i32) -> (i32, i32) {
    %c0_i32 = arith.constant 0 : i32
    %c0_i32_0 = arith.constant 0 : i32
    %c0_i32_1 = arith.constant 0 : i32
    return %c0_i32, %c0_i32_0 : i32, i32
  }
  func.func @transform_4(%arg0: i32) -> (i32, i32) {
    %c0_i32 = arith.constant 0 : i32
    %c0_i32_0 = arith.constant 0 : i32
    %c0_i32_1 = arith.constant 0 : i32
    return %c0_i32, %c0_i32_0 : i32, i32
  }
  func.func @transform_5(%arg0: i32) -> (i32, i32, i32) {
    %c0_i32 = arith.constant 0 : i32
    %c0_i32_0 = arith.constant 0 : i32
    %c0_i32_1 = arith.constant 0 : i32
    return %arg0, %c0_i32, %c0_i32_0 : i32, i32, i32
  }
}

</mosaic_0001>

<bundles_post_ra>
// kernel: channel_gate.1
= control target key start
LH: loop header
LB: loop body
LE: loop exit
PB: predicated region body
PF: predicated region fallthrough
CT: control target
= control target key end

     0   :  { %s1568_s18 = smov 0   ;;  %s1910_s0 = inlined_call_operand.vmem [shape: f32[4,128,128], index: 0, kind: input, shape index: {}]   ;;  %s1911_s1 = inlined_call_operand.vmem [shape: f32[8,128], index: 1, kind: input, shape index: {}]   ;;  %s1912_s2 = inlined_call_operand.vmem [shape: f32[8,1], index: 2, kind: input, shape index: {}]   ;;  %s1913_s3 = inlined_call_operand.vmem [shape: f32[128,8], index: 3, kind: input, shape index: {}]   ;;  %s1914_s4 = inlined_call_operand.vmem [shape: f32[128,1], index: 4, kind: input, shape index: {}]   ;;  %s1915_s5 = inlined_call_operand.vmem [shape: f32[4,128,128], index: 5, kind: output, shape index: {}]  }
   0x1 LB: > { %s1115_s19 = sadd.s32 4294967295, %s1532_s18   ;;  %p1119_p0 = scmp.ge.s32.totalorder %s1532_s18, 1  ;;  %s1532_s18 = sphi %s1568_s18, %s15_s18  }
   0x2   : > { %p187_p1 = scmp.lt.s32.totalorder %s1532_s18, 5 }
   0x4   : > { %p188_p2 = pnand %p1119_p0, %p187_p1 }
   0x5   : > { %p215_p3 = scmp.lt.s32.totalorder (!%p188_p2), %s1115_s19, 3  ;;  %v1534_v14 = vmov (!%p188_p2), 0.0|0.0   ;;  %vm1535_vm0 = vmmov (!%p188_p2), 0   ;;  %v1536_v17 = vmov (!%p188_p2), 0.0   ;;  %v1679_v58 = vld [vmem:[%s1911_s1] sm:$0xff] (!%p188_p2)  ;;  %vm426_vm1 = vcmask (!%p188_p2), 64512  }
   0x6   : > { %191 = sbr.rel (%p188_p2) target bundleno = 1079 (0x437), region = 40  ;;  %1350 = vmatprep.subr.bf16.mxu0 (!%p188_p2), %v1534_v14  ;;  %1260 = vmatprep.mubr.msk.f32.mxu0 (!%p188_p2), %vm1535_vm0, %v1536_v17  ;;  %v323_v59 = vld [vmem:[%s1913_s3] sm:$0xff] (!%p188_p2) }
   0x7   : > { %1265 = vmatprep.mubr.msk.f32.mxu1 (!%p188_p2), %vm426_vm1, %v323_v59 }
   0xd   : > { %s1917_s19 = smov (!%p215_p3, %s1115_s19), 3 }
   0xe   : > { %s1158_s20 = sshll.u32 %s1917_s19, 7 }
   0xf   : > { %s1584_s23 = scalar_lea.vmem %s1910_s0, %s1158_s20  ;;  %s1873_s28 = scalar_lea.vmem %s1915_s5, %s1158_s20 }
  0x10   : > { %v1587_v0 = vld [vmem:[%s1584_s23 + $0x10] sm:$0xff]  ;;  %v1590_v1 = vld [vmem:[%s1584_s23] sm:$0xff]  ;;  %v1595_v2 = vld [vmem:[%s1584_s23 + $0x18] sm:$0xff] }
  0x11   : > { %245 = vadd.xlane.f32.xlu1 %v1587_v0  ;;  %241 = vadd.xlane.f32.xlu0 %v1590_v1  ;;  %v1598_v3 = vld [vmem:[%s1584_s23 + $0x8] sm:$0xff]  ;;  %v1606_v5 = vld [vmem:[%s1584_s23 + $0x20] sm:$0xff]  ;;  %v1611_v6 = vld [vmem:[%s1584_s23 + $0x38] sm:$0xff] }
  0x12   : > { %v1603_v4 = vld [vmem:[%s1584_s23 + $0x28] sm:$0xff]  ;;  %v1614_v7 = vld [vmem:[%s1584_s23 + $0x30] sm:$0xff]  ;;  %v1622_v9 = vld [vmem:[%s1584_s23 + $0x40] sm:$0xff] }
  0x13   : > { %v1619_v8 = vld [vmem:[%s1584_s23 + $0x48] sm:$0xff]  ;;  %v1627_v10 = vld [vmem:[%s1584_s23 + $0x58] sm:$0xff]  ;;  %v1630_v11 = vld [vmem:[%s1584_s23 + $0x50] sm:$0xff] }
  0x14   : > { %v1635_v12 = vld [vmem:[%s1584_s23 + $0x68] sm:$0xff]  ;;  %v1638_v13 = vld [vmem:[%s1584_s23 + $0x60] sm:$0xff]  ;;  %v1644_v15 = vld [vmem:[%s1584_s23 + $0x78] sm:$0xff] }
  0x15   : > { %247 = vadd.xlane.f32.xlu1 %v1595_v2  ;;  %243 = vadd.xlane.f32.xlu0 %v1598_v3  ;;  %v1647_v16 = vld [vmem:[%s1584_s23 + $0x70] sm:$0xff] }
  0x19   : > { %251 = vadd.xlane.f32.xlu1 %v1603_v4  ;;  %249 = vadd.xlane.f32.xlu0 %v1606_v5 }
  0x1d   : > { %255 = vadd.xlane.f32.xlu1 %v1611_v6  ;;  %253 = vadd.xlane.f32.xlu0 %v1614_v7 }
  0x21   : > { %259 = vadd.xlane.f32.xlu1 %v1619_v8  ;;  %257 = vadd.xlane.f32.xlu0 %v1622_v9 }
  0x25   : > { %263 = vadd.xlane.f32.xlu1 %v1627_v10  ;;  %261 = vadd.xlane.f32.xlu0 %v1630_v11 }
  0x29   : > { %267 = vadd.xlane.f32.xlu1 %v1635_v12  ;;  %265 = vadd.xlane.f32.xlu0 %v1638_v13 }
  0x2d   : > { %271 = vadd.xlane.f32.xlu1 %v1644_v15  ;;  %269 = vadd.xlane.f32.xlu0 %v1647_v16 }
  0x31   : > { %291 = vmax.xlane.f32.xlu1 %v1598_v3  ;;  %289 = vmax.xlane.f32.xlu0 %v1590_v1 }
  0x35   : > { %295 = vmax.xlane.f32.xlu1 %v1595_v2  ;;  %293 = vmax.xlane.f32.xlu0 %v1587_v0 }
  0x39   : > { %299 = vmax.xlane.f32.xlu1 %v1603_v4  ;;  %297 = vmax.xlane.f32.xlu0 %v1606_v5 }
  0x3d   : > { %303 = vmax.xlane.f32.xlu1 %v1611_v6  ;;  %301 = vmax.xlane.f32.xlu0 %v1614_v7 }
  0x41   : > { %307 = vmax.xlane.f32.xlu1 %v1619_v8  ;;  %305 = vmax.xlane.f32.xlu0 %v1622_v9 }
  0x45   : > { %311 = vmax.xlane.f32.xlu1 %v1627_v10  ;;  %309 = vmax.xlane.f32.xlu0 %v1630_v11 }
  0x49   : > { %315 = vmax.xlane.f32.xlu1 %v1635_v12  ;;  %313 = vmax.xlane.f32.xlu0 %v1638_v13 }
  0x4d   : > { %319 = vmax.xlane.f32.xlu1 %v1644_v15  ;;  %317 = vmax.xlane.f32.xlu0 %v1647_v16 }
  0x9e   : > { %v246_v18 = vpop.xlane.xlu1 %245  ;;  %v242_v19 = vpop.xlane.xlu0 %241 }
  0x9f   : > { %v273_v22 = vmul.f32 0.0078125, %v242_v19  ;;  %v275_v24 = vmul.f32 0.0078125, %v246_v18  ;;  %v1690_v18 = vld [vmem:[%s1912_s2] sm:$0xff] }
  0xa2   : > { %v248_v20 = vpop.xlane.xlu1 %247  ;;  %v244_v21 = vpop.xlane.xlu0 %243 }
  0xa3   : > { %v274_v23 = vmul.f32 0.0078125, %v244_v21  ;;  %v276_v25 = vmul.f32 0.0078125, %v248_v20 }
  0xa5   : > { %v1351_v26 = vpack.c.bf16 %v274_v23, %v273_v22  ;;  %v1354_v31 = vpack.c.bf16 %v276_v25, %v275_v24 }
  0xa6   : > { %v252_v27 = vpop.xlane.xlu1 %251  ;;  %v250_v28 = vpop.xlane.xlu0 %249 }
  0xa7   : > { %1352 = vmatpush3.bf16.msra.mxu0 %v1351_v26  ;;  %v278_v29 = vmul.f32 0.0078125, %v252_v27  ;;  %v277_v30 = vmul.f32 0.0078125, %v250_v28  ;;  %v1696_v26 = vld [vmem:[%s1913_s3 + $0x8] sm:$0xff]  ;;  %v1701_v27 = vld [vmem:[%s1913_s3 + $0x10] sm:$0xff] }
  0xa8   : > { %1353 = vmatprep.subr.bf16.mxu0 %v1534_v14 }
  0xa9   : > { %v1357_v34 = vpack.c.bf16 %v278_v29, %v277_v30 }
  0xaa   : > { %v256_v32 = vpop.xlane.xlu1 %255  ;;  %v254_v33 = vpop.xlane.xlu0 %253 }
  0xab   : > { %1355 = vmatpush3.bf16.msra.mxu0 %v1354_v31  ;;  %v280_v35 = vmul.f32 0.0078125, %v256_v32  ;;  %v279_v36 = vmul.f32 0.0078125, %v254_v33  ;;  %v1711_v31 = vld [vmem:[%s1913_s3 + $0x18] sm:$0xff]  ;;  %v1717_v32 = vld [vmem:[%s1913_s3 + $0x20] sm:$0xff] }
  0xac   : > { %1356 = vmatprep.subr.bf16.mxu0 %v1534_v14 }
  0xad   : > { %v1360_v39 = vpack.c.bf16 %v280_v35, %v279_v36  ;;  %v1726_v36 = vld [vmem:[%s1913_s3 + $0x28] sm:$0xff] }
  0xae   : > { %v260_v37 = vpop.xlane.xlu1 %259  ;;  %v258_v38 = vpop.xlane.xlu0 %257 }
  0xaf   : > { %1358 = vmatpush3.bf16.msra.mxu0 %v1357_v34  ;;  %v282_v40 = vmul.f32 0.0078125, %v260_v37  ;;  %v281_v41 = vmul.f32 0.0078125, %v258_v38  ;;  %v1732_v37 = vld [vmem:[%s1913_s3 + $0x30] sm:$0xff] }
  0xb0   : > { %1359 = vmatprep.subr.bf16.mxu0 %v1534_v14 }
  0xb1   : > { %v1363_v44 = vpack.c.bf16 %v282_v40, %v281_v41  ;;  %v331_v40 = vld [vmem:[%s1913_s3 + $0x40] sm:$0xff] }
  0xb2   : > { %v264_v42 = vpop.xlane.xlu1 %263  ;;  %v262_v43 = vpop.xlane.xlu0 %261 }
  0xb3   : > { %1361 = vmatpush3.bf16.msra.mxu0 %v1360_v39  ;;  %v284_v45 = vmul.f32 0.0078125, %v264_v42  ;;  %v283_v46 = vmul.f32 0.0078125, %v262_v43  ;;  %v1741_v39 = vld [vmem:[%s1913_s3 + $0x38] sm:$0xff] }
  0xb4   : > { %1362 = vmatprep.subr.bf16.mxu0 %v1534_v14 }
  0xb5   : > { %v1366_v49 = vpack.c.bf16 %v284_v45, %v283_v46  ;;  %v333_v45 = vld [vmem:[%s1913_s3 + $0x50] sm:$0xff] }
  0xb6   : > { %v268_v47 = vpop.xlane.xlu1 %267  ;;  %v266_v48 = vpop.xlane.xlu0 %265 }
  0xb7   : > { %1364 = vmatpush3.bf16.msra.mxu0 %v1363_v44  ;;  %v286_v50 = vmul.f32 0.0078125, %v268_v47  ;;  %v285_v51 = vmul.f32 0.0078125, %v266_v48  ;;  %v332_v44 = vld [vmem:[%s1913_s3 + $0x48] sm:$0xff] }
  0xb8   : > { %1365 = vmatprep.subr.bf16.mxu0 %v1534_v14 }
  0xb9   : > { %v1369_v54 = vpack.c.bf16 %v286_v50, %v285_v51  ;;  %v335_v50 = vld [vmem:[%s1913_s3 + $0x60] sm:$0xff] }
  0xba   : > { %v272_v52 = vpop.xlane.xlu1 %271  ;;  %v270_v53 = vpop.xlane.xlu0 %269 }
  0xbb   : > { %1367 = vmatpush3.bf16.msra.mxu0 %v1366_v49  ;;  %v288_v55 = vmul.f32 0.0078125, %v272_v52  ;;  %v287_v56 = vmul.f32 0.0078125, %v270_v53  ;;  %v334_v49 = vld [vmem:[%s1913_s3 + $0x58] sm:$0xff]  ;;  %v336_v52 = vld [vmem:[%s1913_s3 + $0x68] sm:$0xff] }
  0xbc   : > { %1368 = vmatprep.subr.bf16.mxu0 %v1534_v14 }
  0xbd   : > { %v1372_v57 = vpack.c.bf16 %v288_v55, %v287_v56  ;;  %v337_v55 = vld [vmem:[%s1913_s3 + $0x70] sm:$0xff] }
  0xbe   : > { %v292_v60 = vpop.xlane.xlu1 %291  ;;  %v290_v61 = vpop.xlane.xlu0 %289 }
  0xbf   : > { %1370 = vmatpush3.bf16.msra.mxu0 %v1369_v54  ;;  %v1375_v25 = vpack.c.bf16 %v292_v60, %v290_v61 }
  0xc0   : > { %1371 = vmatprep.subr.bf16.mxu0 %v1534_v14 }
  0xc2   : > { %v296_v62 = vpop.xlane.xlu1 %295  ;;  %v294_v63 = vpop.xlane.xlu0 %293 }
  0xc3   : > { %1373 = vmatpush3.bf16.msra.mxu0 %v1372_v57  ;;  %v1378_v30 = vpack.c.bf16 %v296_v62, %v294_v63  ;;  %v338_v57 = vld [vmem:[%s1913_s3 + $0x78] sm:$0xff] }
  0xc6   : > { %1261 = vmatmul.mubr.f32.vlgmr.msra.gmra.mrb[0].mxu0 %v1679_v58  ;;  %v300_v19 = vpop.xlane.xlu1 %299  ;;  %v298_v20 = vpop.xlane.xlu0 %297 }
  0xc7   : > { %1326 = vmatprep.mubr.msk.f32.mxu0 %vm426_vm1, %v323_v59  ;;  %v1381_v35 = vpack.c.bf16 %v300_v19, %v298_v20 }
  0xca   : > { %v304_v28 = vpop.xlane.xlu1 %303  ;;  %v302_v29 = vpop.xlane.xlu0 %301 }
  0xcb   : > { %v1384_v38 = vpack.c.bf16 %v304_v28, %v302_v29  ;;  %v347_v28 = vld [vmem:[%s1914_s4 + $0x40] sm:$0xff] }
  0xce   : > { %v308_v33 = vpop.xlane.xlu1 %307  ;;  %v306_v34 = vpop.xlane.xlu0 %305 }
  0xcf   : > { %v1387_v43 = vpack.c.bf16 %v308_v33, %v306_v34  ;;  %v1426_v34 = vadd.f32 %v347_v28, %v347_v28 }
  0xd2   : > { %v312_v41 = vpop.xlane.xlu1 %311  ;;  %v310_v42 = vpop.xlane.xlu0 %309 }
  0xd3   : > { %v1390_v48 = vpack.c.bf16 %v312_v41, %v310_v42 }
  0xd6   : > { %v316_v46 = vpop.xlane.xlu1 %315  ;;  %v314_v47 = vpop.xlane.xlu0 %313 }
  0xd7   : > { %v1393_v51 = vpack.c.bf16 %v316_v46, %v314_v47 }
  0xda   : > { %v320_v53 = vpop.xlane.xlu1 %319  ;;  %v318_v54 = vpop.xlane.xlu0 %317 }
  0xdb   : > { %v1396_v56 = vpack.c.bf16 %v320_v53, %v318_v54 }
 0x199   : > { %v421_v21 = vpop.f32.mrb[0].mxu0 }
 0x19a   : > { %v422_v22 = vadd.f32 %v421_v21, %v1690_v18  ;;  %v1262_v23 = vpop.f32.mrb[1].mxu0 }
 0x19c   : > { %v425_v24 = vmax.f32 %v422_v22, 0.0 }
 0x19e   : > { %1263 = vmatprep.subr.mxu1 %v425_v24 }
 0x19f   : > { %1264 = vmatpush3.msra.mxu1 %v425_v24  ;;  %v339_v24 = vld [vmem:[%s1914_s4] sm:$0xff] }
 0x1a0   : > { %1266 = vmatmul.mubr.msk.f32.vlgmr.msra.gmra.mrb[0].mxu1 %vm426_vm1, %v1696_v26  ;;  %1374 = vmatprep.subr.bf16.mxu1 %v1534_v14 }
 0x1a1   : > { %1376 = vmatpush3.bf16.msra.mxu1 %v1375_v25  ;;  %1268 = vmatprep.mubr.msk.f32.mxu1 %vm426_vm1, %v1701_v27  ;;  %v348_v25 = vld [vmem:[%s1914_s4 + $0x48] sm:$0xff] }
 0x1a2   : > { %1377 = vmatprep.subr.bf16.mxu1 %v1534_v14 }
 0x1a4   : > { %1269 = vmatmul.mubr.msk.f32.gmra.mrb[2].mxu1 %vm426_vm1, %v1711_v31 }
 0x1a5   : > { %1379 = vmatpush3.bf16.msra.mxu1 %v1378_v30  ;;  %1271 = vmatprep.mubr.msk.f32.mxu1 %vm426_vm1, %v1717_v32  ;;  %v341_v30 = vld [vmem:[%s1914_s4 + $0x10] sm:$0xff] }
 0x1a6   : > { %1380 = vmatprep.subr.bf16.mxu1 %v1534_v14 }
 0x1a8   : > { %1272 = vmatmul.mubr.msk.f32.gmra.mrb[4].mxu1 %vm426_vm1, %v1726_v36 }
 0x1a9   : > { %1382 = vmatpush3.bf16.msra.mxu1 %v1381_v35  ;;  %1274 = vmatprep.mubr.msk.f32.mxu1 %vm426_vm1, %v1732_v37  ;;  %v350_v35 = vld [vmem:[%s1914_s4 + $0x58] sm:$0xff] }
 0x1aa   : > { %1383 = vmatprep.subr.bf16.mxu1 %v1534_v14 }
 0x1ac   : > { %1275 = vmatmul.mubr.msk.f32.gmra.mrb[6].mxu1 %vm426_vm1, %v1741_v39 }
 0x1ad   : > { %1385 = vmatpush3.bf16.msra.mxu1 %v1384_v38  ;;  %1277 = vmatprep.mubr.msk.f32.mxu1 %vm426_vm1, %v331_v40  ;;  %v346_v38 = vld [vmem:[%s1914_s4 + $0x38] sm:$0xff] }
 0x1ae   : > { %1386 = vmatprep.subr.bf16.mxu1 %v1534_v14 }
 0x1b0   : > { %1278 = vmatmul.mubr.msk.f32.gmra.mrb[8].mxu1 %vm426_vm1, %v332_v44 }
 0x1b1   : > { %1388 = vmatpush3.bf16.msra.mxu1 %v1387_v43  ;;  %1280 = vmatprep.mubr.msk.f32.mxu1 %vm426_vm1, %v333_v45  ;;  %v349_v43 = vld [vmem:[%s1914_s4 + $0x50] sm:$0xff] }
 0x1b2   : > { %1389 = vmatprep.subr.bf16.mxu1 %v1534_v14 }
 0x1b4   : > { %1281 = vmatmul.mubr.msk.f32.gmra.mrb[10].mxu1 %vm426_vm1, %v334_v49 }
 0x1b5   : > { %1391 = vmatpush3.bf16.msra.mxu1 %v1390_v48  ;;  %1283 = vmatprep.mubr.msk.f32.mxu1 %vm426_vm1, %v335_v50 }
 0x1b6   : > { %1392 = vmatprep.subr.bf16.mxu1 %v1534_v14 }
 0x1b8   : > { %1284 = vmatmul.mubr.msk.f32.gmra.mrb[12].mxu1 %vm426_vm1, %v336_v52 }
 0x1b9   : > { %1394 = vmatpush3.bf16.msra.mxu1 %v1393_v51  ;;  %1286 = vmatprep.mubr.msk.f32.mxu1 %vm426_vm1, %v337_v55  ;;  %v1418_v51 = vadd.f32 %v346_v38, %v346_v38 }
 0x1ba   : > { %1395 = vmatprep.subr.bf16.mxu1 %v1534_v14 }
 0x1bc   : > { %1287 = vmatmul.mubr.msk.f32.gmra.mrb[14].mxu1 %vm426_vm1, %v338_v57 }
 0x1bd   : > { %1397 = vmatpush3.bf16.msra.mxu1 %v1396_v56  ;;  %1321 = vmatprep.mubr.msk.f32.mxu1 %vm1535_vm0, %v1536_v17 }
 0x1c0   : > { %1322 = vmatmul.mubr.f32.vlgmr.msra.gmra.mrb[16].mxu1 %v1679_v58  ;;  %v1537_v58 = vmov 0  }
 0x1c1   : > { %1338 = vmatprep.mubr.msk.f32.mxu1 %vm426_vm1, %v331_v40  ;;  %1461 = vset.pattern.permute.xlu0 %v1537_v58 }
 0x1c2   : > { %1460 = vset.pattern.permute.xlu1 %v1537_v58 }
 0x273   : > { %v1267_v59 = vpop.f32.mrb[0].mxu1 }
 0x274   : > { %v541_v60 = vpop.f32.mrb[1].mxu1 }
 0x275   : > { %v542_v29 = vadd.f32 %v541_v60, %v339_v24 }
 0x277   : > { %v1270_v61 = vpop.f32.mrb[2].mxu1  ;;  %v1404_v42 = vadd.f32 %v542_v29, %v339_v24 }
 0x278   : > { %v551_v62 = vpop.f32.mrb[3].mxu1 }
 0x27b   : > { %v1786_v63 = vpop.f32.mrb[4].mxu1 }
 0x27c   : > { %v1788_v19 = vpop.f32.mrb[5].mxu1 }
 0x27f   : > { %v1790_v20 = vpop.f32.mrb[6].mxu1 }
 0x280   : > { %v1792_v14 = vpop.f32.mrb[7].mxu1 }
 0x293   : > { %v686_v21 = vpop.f32.mrb[16].mxu1 }
 0x294   : > { %v687_v22 = vadd.f32 %v686_v21, %v1690_v18  ;;  %v1323_v17 = vpop.f32.mrb[17].mxu1  ;;  %v340_v18 = vld [vmem:[%s1914_s4 + $0x8] sm:$0xff]  ;;  %v345_v21 = vld [vmem:[%s1914_s4 + $0x30] sm:$0xff] }
 0x296   : > { %v690_v23 = vmax.f32 %v687_v22, 0.0 }
 0x298   : > { %1324 = vmatprep.subr.mxu0 %v690_v23  ;;  %1398 = vmatprep.subr.mxu1 %v690_v23 }
 0x299   : > { %1325 = vmatpush3.msra.mxu0 %v690_v23  ;;  %1399 = vmatpush3.msra.mxu1 %v690_v23 }
 0x29a   : > { %1327 = vmatmul.mubr.msk.f32.vlgmr.msra.gmra.mrb[2].mxu0 %vm426_vm1, %v1696_v26  ;;  %1339 = vmatmul.mubr.msk.f32.vlgmr.msra.gmra.mrb[8].mxu1 %vm426_vm1, %v332_v44  ;;  %v1400_v26 = vadd.f32 %v340_v18, %v340_v18  ;;  %v343_v44 = vld [vmem:[%s1914_s4 + $0x20] sm:$0xff] }
 0x29b   : > { %1329 = vmatprep.mubr.msk.f32.mxu0 %vm426_vm1, %v1701_v27  ;;  %1341 = vmatprep.mubr.msk.f32.mxu1 %vm426_vm1, %v333_v45  ;;  %v342_v27 = vld [vmem:[%s1914_s4 + $0x18] sm:$0xff] }
 0x29c   : > { %v1406_v33 = vadd.f32 %v342_v27, %v342_v27 }
 0x29e   : > { %1330 = vmatmul.mubr.msk.f32.gmra.mrb[4].mxu0 %vm426_vm1, %v1711_v31  ;;  %1342 = vmatmul.mubr.msk.f32.gmra.mrb[10].mxu1 %vm426_vm1, %v334_v49  ;;  %v344_v31 = vld [vmem:[%s1914_s4 + $0x28] sm:$0xff]  ;;  %v1428_v49 = vadd.f32 %v350_v35, %v350_v35 }
 0x29f   : > { %1332 = vmatprep.mubr.msk.f32.mxu0 %vm426_vm1, %v1717_v32  ;;  %1344 = vmatprep.mubr.msk.f32.mxu1 %vm426_vm1, %v335_v50  ;;  %v1424_v32 = vadd.f32 %v348_v25, %v348_v25  ;;  %v1407_v50 = vadd.f32 %v1406_v33, %v1270_v61  ;;  %v572_v33 = vadd.f32 %v1792_v14, %v345_v21  ;;  %v351_v14 = vld [vmem:[%s1914_s4 + $0x60] sm:$0xff] }
 0x2a2   : > { %1333 = vmatmul.mubr.msk.f32.gmra.mrb[6].mxu0 %vm426_vm1, %v1726_v36  ;;  %1345 = vmatmul.mubr.msk.f32.gmra.mrb[12].mxu1 %vm426_vm1, %v336_v52  ;;  %v1401_v36 = vadd.f32 %v1400_v26, %v1267_v59  ;;  %v352_v59 = vld [vmem:[%s1914_s4 + $0x68] sm:$0xff] }
 0x2a3   : > { %1335 = vmatprep.mubr.msk.f32.mxu0 %vm426_vm1, %v1732_v37  ;;  %1347 = vmatprep.mubr.msk.f32.mxu1 %vm426_vm1, %v337_v55  ;;  %v552_v37 = vadd.f32 %v551_v62, %v341_v30  ;;  %v562_v62 = vadd.f32 %v1788_v19, %v343_v44 }
 0x2a5   : > { %v1410_v56 = vadd.f32 %v552_v37, %v341_v30  ;;  %v1416_v37 = vadd.f32 %v562_v62, %v343_v44 }
 0x2a6   : > { %1336 = vmatmul.mubr.msk.f32.gmra.mrb[8].mxu0 %vm426_vm1, %v1741_v39  ;;  %1348 = vmatmul.mubr.msk.f32.gmra.mrb[14].mxu1 %vm426_vm1, %v338_v57  ;;  %v1412_v39 = vadd.f32 %v344_v31, %v344_v31  ;;  %v1430_v57 = vadd.f32 %v349_v43, %v349_v43 }
 0x2a8   : > { %v1413_v60 = vadd.f32 %v1412_v39, %v1786_v63  ;;  %v1432_v63 = vadd.f32 %v352_v59, %v352_v59  ;;  %v354_v59 = vld [vmem:[%s1914_s4 + $0x78] sm:$0xff] }
 0x36d   : > { %v1328_v40 = vpop.f32.mrb[2].mxu0  ;;  %v1340_v41 = vpop.f32.mrb[8].mxu1 }
 0x36e   : > { %v1402_v45 = vadd.f32 %v1401_v36, %v1328_v40  ;;  %v1425_v46 = vadd.f32 %v1424_v32, %v1340_v41  ;;  %v757_v47 = vpop.f32.mrb[3].mxu0  ;;  %v797_v48 = vpop.f32.mrb[9].mxu1 }
 0x36f   : > { %v1405_v52 = vadd.f32 %v1404_v42, %v757_v47  ;;  %v1427_v53 = vadd.f32 %v1426_v34, %v797_v48  ;;  %v1419_v48 = vadd.f32 %v1418_v51, %v1790_v20  ;;  %v1436_v51 = vadd.f32 %v354_v59, %v354_v59 }
 0x370   : > { %v853_v54 = vsub.f32 0.0, %v1402_v45  ;;  %v861_v55 = vsub.f32 0.0, %v1425_v46 }
 0x371   : > { %v852_v61 = vsub.f32 0.0, %v1405_v52  ;;  %v860_v22 = vsub.f32 0.0, %v1427_v53  ;;  %v1331_v17 = vpop.f32.mrb[4].mxu0  ;;  %v1343_v23 = vpop.f32.mrb[10].mxu1  ;;  %v1422_v53 = vadd.f32 %v572_v33, %v345_v21  ;;  %v353_v33 = vld [vmem:[%s1914_s4 + $0x70] sm:$0xff] }
 0x372   : > { %v870_v58 = vmul.f32 1.442695, %v853_v54  ;;  %v886_v18 = vmul.f32 1.442695, %v861_v55  ;;  %v1408_v24 = vadd.f32 %v1407_v50, %v1331_v17  ;;  %v1429_v25 = vadd.f32 %v1428_v49, %v1343_v23  ;;  %v767_v26 = vpop.f32.mrb[5].mxu0  ;;  %v807_v27 = vpop.f32.mrb[11].mxu1 }
 0x373   : > { %v868_v28 = vmul.f32 1.442695, %v852_v61  ;;  %v884_v29 = vmul.f32 1.442695, %v860_v22  ;;  %v1411_v30 = vadd.f32 %v1410_v56, %v767_v26  ;;  %v1431_v32 = vadd.f32 %v1430_v57, %v807_v27 }
 0x374   : > { %1462 = vpow2.f32 %v870_v58  ;;  %v855_v19 = vsub.f32 0.0, %v1408_v24  ;;  %v863_v31 = vsub.f32 0.0, %v1429_v25  ;;  %v1434_v56 = vadd.f32 %v351_v14, %v351_v14 }
 0x375   : > { %1464 = vpow2.f32 %v886_v18  ;;  %v854_v34 = vsub.f32 0.0, %v1411_v30  ;;  %v1334_v35 = vpop.f32.mrb[6].mxu0  ;;  %v1346_v36 = vpop.f32.mrb[12].mxu1  ;;  %v862_v46 = vsub.f32 0.0, %v1431_v32 }
 0x376   : > { %1466 = vpow2.f32 %v868_v28  ;;  %v874_v38 = vmul.f32 1.442695, %v855_v19  ;;  %v890_v39 = vmul.f32 1.442695, %v863_v31  ;;  %v1414_v40 = vadd.f32 %v1413_v60, %v1334_v35  ;;  %v777_v41 = vpop.f32.mrb[7].mxu0  ;;  %v817_v42 = vpop.f32.mrb[13].mxu1 }
 0x377   : > { %1468 = vpow2.f32 %v884_v29  ;;  %v872_v43 = vmul.f32 1.442695, %v854_v34  ;;  %v1433_v45 = vadd.f32 %v1432_v63, %v1346_v36  ;;  %v1417_v47 = vadd.f32 %v1416_v37, %v777_v41 }
 0x378   : > { %1470 = vpow2.f32 %v874_v38  ;;  %v888_v60 = vmul.f32 1.442695, %v862_v46  ;;  %v857_v62 = vsub.f32 0.0, %v1414_v40  ;;  %v1435_v23 = vadd.f32 %v1434_v56, %v817_v42 }
 0x379   : > { %1472 = vpow2.f32 %v890_v39  ;;  %v865_v44 = vsub.f32 0.0, %v1433_v45  ;;  %v1337_v49 = vpop.f32.mrb[8].mxu0  ;;  %v1349_v50 = vpop.f32.mrb[14].mxu1  ;;  %v856_v24 = vsub.f32 0.0, %v1417_v47  ;;  %v1438_v40 = vadd.f32 %v353_v33, %v353_v33 }
 0x37a   : > { %v787_v52 = vpop.f32.mrb[9].mxu0  ;;  %v827_v54 = vpop.f32.mrb[15].mxu1  ;;  %1474 = vpow2.f32 %v872_v43  ;;  %v1420_v57 = vadd.f32 %v1419_v48, %v1337_v49  ;;  %v878_v18 = vmul.f32 1.442695, %v857_v62  ;;  %v1437_v29 = vadd.f32 %v1436_v51, %v1349_v50 }
 0x37b   : > { %v894_v55 = vmul.f32 1.442695, %v865_v44  ;;  %v1423_v61 = vadd.f32 %v1422_v53, %v787_v52  ;;  %v864_v63 = vsub.f32 0.0, %v1435_v23  ;;  %v876_v19 = vmul.f32 1.442695, %v856_v24 }
 0x37c   : > { %v867_v35 = vsub.f32 0.0, %v1437_v29  ;;  %v859_v39 = vsub.f32 0.0, %v1420_v57  ;;  %v1439_v48 = vadd.f32 %v1438_v40, %v827_v54 }
 0x37d   : > { %1476 = vpow2.f32 %v894_v55  ;;  %v892_v37 = vmul.f32 1.442695, %v864_v63  ;;  %v858_v14 = vsub.f32 0.0, %v1423_v61 }
 0x37e   : > { %v1463_v20 = vpop.eup %1462  ;;  %1478 = vpow2.f32 %v888_v60  ;;  %v898_v43 = vmul.f32 1.442695, %v867_v35  ;;  %v882_v47 = vmul.f32 1.442695, %v859_v39  ;;  %v866_v55 = vsub.f32 0.0, %v1439_v48 }
 0x37f   : > { %v1465_v22 = vpop.eup %1464  ;;  %v901_v17 = vadd.f32 1.0, %v1463_v20  ;;  %v880_v53 = vmul.f32 1.442695, %v858_v14 }
 0x380   : > { %v1467_v58 = vpop.eup %1466  ;;  %v909_v21 = vadd.f32 1.0, %v1465_v22  ;;  %v896_v54 = vmul.f32 1.442695, %v866_v55 }
 0x381   : > { %v1469_v25 = vpop.eup %1468  ;;  %1480 = vrcp.f32 %v901_v17  ;;  %v900_v27 = vadd.f32 1.0, %v1467_v58 }
 0x382   : > { %v1471_v26 = vpop.eup %1470  ;;  %1482 = vrcp.f32 %v909_v21  ;;  %v908_v28 = vadd.f32 1.0, %v1469_v25 }
 0x383   : > { %v1473_v30 = vpop.eup %1472  ;;  %1484 = vpow2.f32 %v878_v18  ;;  %v903_v32 = vadd.f32 1.0, %v1471_v26 }
 0x384   : > { %v1475_v31 = vpop.eup %1474  ;;  %1486 = vrcp.f32 %v908_v28  ;;  %v911_v34 = vadd.f32 1.0, %v1473_v30 }
 0x385   : > { %1488 = vrcp.f32 %v900_v27  ;;  %v902_v38 = vadd.f32 1.0, %v1475_v31 }
 0x386   : > { %1490 = vpow2.f32 %v876_v19 }
 0x387   : > { %v1477_v36 = vpop.eup %1476  ;;  %1492 = vrcp.f32 %v903_v32 }
 0x388   : > { %v913_v41 = vadd.f32 1.0, %v1477_v36  ;;  %v1479_v42 = vpop.eup %1478  ;;  %1494 = vrcp.f32 %v911_v34 }
 0x389   : > { %1496 = vpow2.f32 %v892_v37  ;;  %v910_v44 = vadd.f32 1.0, %v1479_v42 }
 0x38a   : > { %1498 = vrcp.f32 %v902_v38 }
 0x38b   : > { %v1481_v45 = vpop.eup %1480  ;;  %1500 = vrcp.f32 %v913_v41 }
 0x38c   : > { %v1483_v46 = vpop.eup %1482  ;;  %955 = vperm.xlu1 %1460, %v1481_v45   ;;  %1502 = vpow2.f32 %v898_v43 }
 0x38d   : > { %995 = vperm.xlu0 %1461, %v1483_v46   ;;  %v1485_v49 = vpop.eup %1484  ;;  %1504 = vpow2.f32 %v882_v47 }
 0x38e   : > { %v1487_v50 = vpop.eup %1486  ;;  %1506 = vrcp.f32 %v910_v44  ;;  %v905_v56 = vadd.f32 1.0, %v1485_v49 }
 0x38f   : > { %v1489_v52 = vpop.eup %1488  ;;  %1508 = vpow2.f32 %v880_v53 }
 0x390   : > { %990 = vperm.xlu1 %1460, %v1487_v50   ;;  %v1491_v57 = vpop.eup %1490  ;;  %1510 = vrcp.f32 %v905_v56 }
 0x391   : > { %950 = vperm.xlu0 %1461, %v1489_v52   ;;  %v1493_v59 = vpop.eup %1492  ;;  %v904_v61 = vadd.f32 1.0, %v1491_v57  ;;  %1512 = vpow2.f32 %v896_v54 }
 0x392   : > { %v1495_v60 = vpop.eup %1494 }
 0x393   : > { %v1497_v62 = vpop.eup %1496  ;;  %1514 = vrcp.f32 %v904_v61 }
 0x394   : > { %965 = vperm.xlu1 %1460, %v1493_v59   ;;  %v1499_v20 = vpop.eup %1498  ;;  %v912_v17 = vadd.f32 1.0, %v1497_v62 }
 0x395   : > { %1005 = vperm.xlu0 %1461, %v1495_v60   ;;  %v1501_v51 = vpop.eup %1500 }
 0x396   : > { %v1503_v22 = vpop.eup %1502 }
 0x397   : > { %v915_v23 = vadd.f32 1.0, %v1503_v22  ;;  %v1505_v58 = vpop.eup %1504 }
 0x398   : > { %960 = vperm.xlu1 %1460, %v1499_v20   ;;  %v1507_v21 = vpop.eup %1506  ;;  %v907_v18 = vadd.f32 1.0, %v1505_v58 }
 0x399   : > { %1015 = vperm.xlu0 %1461, %v1501_v51   ;;  %1516 = vrcp.f32 %v915_v23  ;;  %v1509_v24 = vpop.eup %1508 }
 0x39a   : > { %1518 = vrcp.f32 %v912_v17  ;;  %v1511_v25 = vpop.eup %1510  ;;  %v906_v26 = vadd.f32 1.0, %v1509_v24 }
 0x39b   : > { %1520 = vrcp.f32 %v907_v18  ;;  %v1513_v27 = vpop.eup %1512 }
 0x39c   : > { %1000 = vperm.xlu1 %1460, %v1507_v21   ;;  %1522 = vrcp.f32 %v906_v26  ;;  %v914_v30 = vadd.f32 1.0, %v1513_v27 }
 0x39d   : > { %v1515_v28 = vpop.eup %1514 }
 0x39e   : > { %1524 = vrcp.f32 %v914_v30 }
 0x3a0   : > { %975 = vperm.xlu1 %1460, %v1511_v25  }
 0x3a3   : > { %v1517_v29 = vpop.eup %1516 }
 0x3a4   : > { %970 = vperm.xlu1 %1460, %v1515_v28   ;;  %1025 = vperm.xlu0 %1461, %v1517_v29   ;;  %v1519_v63 = vpop.eup %1518 }
 0x3a5   : > { %v1521_v19 = vpop.eup %1520 }
 0x3a6   : > { %v1523_v31 = vpop.eup %1522 }
 0x3a8   : > { %1010 = vperm.xlu1 %1460, %v1519_v63   ;;  %v1525_v32 = vpop.eup %1524 }
 0x3ac   : > { %985 = vperm.xlu1 %1460, %v1521_v19  }
 0x3b0   : > { %980 = vperm.xlu1 %1460, %v1523_v31  }
 0x3b4   : > { %1020 = vperm.xlu1 %1460, %v1525_v32  }
 0x40b   : > { %v956_v33 = vpop.permute.xlu1 %955 }
 0x40c   : > { %v1029_v34 = vmul.f32 %v956_v33, %v1598_v3  ;;  %v996_v35 = vpop.permute.xlu0 %995 }
 0x40d   : > { %v1037_v36 = vmul.f32 %v996_v35, %v1619_v8 }
 0x40e   : > { %1045 = vst [vmem:[%s1873_s28 + $0x8] sm:$0xff] %v1029_v34 }
 0x40f   : > { %1053 = vst [vmem:[%s1873_s28 + $0x48] sm:$0xff] %v1037_v36  ;;  %v991_v37 = vpop.permute.xlu1 %990 }
 0x410   : > { %v951_v38 = vpop.permute.xlu0 %950  ;;  %v1036_v39 = vmul.f32 %v991_v37, %v1622_v9 }
 0x411   : > { %v1028_v40 = vmul.f32 %v951_v38, %v1590_v1 }
 0x412   : > { %1052 = vst [vmem:[%s1873_s28 + $0x40] sm:$0xff] %v1036_v39 }
 0x413   : > { %1044 = vst [vmem:[%s1873_s28] sm:$0xff] %v1028_v40  ;;  %v966_v41 = vpop.permute.xlu1 %965 }
 0x414   : > { %v1031_v3 = vmul.f32 %v966_v41, %v1595_v2  ;;  %v1006_v42 = vpop.permute.xlu0 %1005 }
 0x415   : > { %v1039_v8 = vmul.f32 %v1006_v42, %v1627_v10 }
 0x416   : > { %1047 = vst [vmem:[%s1873_s28 + $0x18] sm:$0xff] %v1031_v3 }
 0x417   : > { %1055 = vst [vmem:[%s1873_s28 + $0x58] sm:$0xff] %v1039_v8  ;;  %v961_v43 = vpop.permute.xlu1 %960 }
 0x418   : > { %v1030_v45 = vmul.f32 %v961_v43, %v1587_v0  ;;  %v1016_v46 = vpop.permute.xlu0 %1015 }
 0x419   : > { %v1041_v1 = vmul.f32 %v1016_v46, %v1635_v12 }
 0x41a   : > { %1046 = vst [vmem:[%s1873_s28 + $0x10] sm:$0xff] %v1030_v45 }
 0x41b   : > { %1057 = vst [vmem:[%s1873_s28 + $0x68] sm:$0xff] %v1041_v1  ;;  %v1001_v9 = vpop.permute.xlu1 %1000 }
 0x41c   : > { %v1038_v2 = vmul.f32 %v1001_v9, %v1630_v11 }
 0x41e   : > { %1054 = vst [vmem:[%s1873_s28 + $0x50] sm:$0xff] %v1038_v2 }
 0x41f   : > { %v976_v47 = vpop.permute.xlu1 %975 }
 0x420   : > { %v1033_v10 = vmul.f32 %v976_v47, %v1603_v4 }
 0x422   : > { %1049 = vst [vmem:[%s1873_s28 + $0x28] sm:$0xff] %v1033_v10 }
 0x423   : > { %v971_v14 = vpop.permute.xlu1 %970  ;;  %v1026_v48 = vpop.permute.xlu0 %1025 }
 0x424   : > { %v1032_v0 = vmul.f32 %v971_v14, %v1606_v5  ;;  %v1043_v12 = vmul.f32 %v1026_v48, %v1644_v15 }
 0x426   : > { %1048 = vst [vmem:[%s1873_s28 + $0x20] sm:$0xff] %v1032_v0  ;;  %1059 = vst [vmem:[%s1873_s28 + $0x78] sm:$0xff] %v1043_v12 }
 0x427   : > { %v1011_v44 = vpop.permute.xlu1 %1010 }
 0x428   : > { %v1040_v49 = vmul.f32 %v1011_v44, %v1638_v13 }
 0x42a   : > { %1056 = vst [vmem:[%s1873_s28 + $0x60] sm:$0xff] %v1040_v49 }
 0x42b   : > { %v986_v11 = vpop.permute.xlu1 %985 }
 0x42c   : > { %v1035_v50 = vmul.f32 %v986_v11, %v1611_v6 }
 0x42e   : > { %1051 = vst [vmem:[%s1873_s28 + $0x38] sm:$0xff] %v1035_v50 }
 0x42f   : > { %v981_v4 = vpop.permute.xlu1 %980 }
 0x430   : > { %v1034_v52 = vmul.f32 %v981_v4, %v1614_v7 }
 0x432   : > { %1050 = vst [vmem:[%s1873_s28 + $0x30] sm:$0xff] %v1034_v52 }
 0x433   : > { %v1021_v53 = vpop.permute.xlu1 %1020 }
 0x434   : > { %v1042_v5 = vmul.f32 %v1021_v53, %v1647_v16 }
 0x436   : > { %1058 = vst [vmem:[%s1873_s28 + $0x70] sm:$0xff] %v1042_v5 }
 0x437 PF: > { %s15_s18 = sadd.s32 1, %s1532_s18  }
 0x438   : > { %p12_p4 = scmp.ge.s32.totalorder %s15_s18, 6  }
 0x43a   :  { %14 = sbr.rel (!%p12_p4) target bundleno = 1 (0x1), region = 70 }

</bundles_post_ra>
